<compile_context>
chip_gen: v6e
topology: v6e:2x2x1
jax: 0.10.0
libtpu: 0.0.40
codegen_flags: <defaults>
</compile_context>

<pallas_src>
import jax
import jax.numpy as jnp
from jax.experimental import pallas as pl
from jax.experimental.pallas import tpu as pltpu


_LANES = 128


# ----------------------------------------------------------------------------
# Shared forward pass:  logits = (x @ W1 + b1) @ W2 + b2   (f32 accumulation)
# ----------------------------------------------------------------------------
def _mlp_logits(x_ref, w1_ref, b1_ref, w2_ref, b2_ref):
    x = x_ref[...].astype(jnp.bfloat16)        # in-kernel bf16 cast (no XLA launch)
    h = jnp.dot(x, w1_ref[...], preferred_element_type=jnp.float32)
    h = h + b1_ref[...]                        # (TB, H1) f32, b1 broadcasts
    logits = jnp.dot(h.astype(jnp.bfloat16), w2_ref[...],
                     preferred_element_type=jnp.float32)
    return logits + b2_ref[...]                # (TB, H2p) f32


# ----------------------------------------------------------------------------
# Kernel 1: inference path  ->  softmax(logits, axis=1) per batch tile.
# Padded classes carry logit = -1e9 (zero weight column + -1e9 bias), so their
# exp() underflows to 0 and the real-class softmax is unchanged.
# ----------------------------------------------------------------------------
def mlp_softmax_kernel(x_ref, w1_ref, b1_ref, w2_ref, b2_ref, o_ref):
    logits = _mlp_logits(x_ref, w1_ref, b1_ref, w2_ref, b2_ref)
    m = jnp.max(logits, axis=-1, keepdims=True)
    e = jnp.exp(logits - m)
    denom = jnp.sum(e, axis=-1, keepdims=True)
    o_ref[...] = (e / denom).astype(o_ref.dtype)   # exact normalization


# ----------------------------------------------------------------------------
# Kernel 2: training path  ->  per-row negative log-likelihood.
# Output is (tb, 1) per grid step; grid axis is fully parallel (no resident
# scalar accumulator), the tiny mean over B happens in the wrapper.
# log_probs is never materialized: loss_row = lse_row - shifted[row, label].
# ----------------------------------------------------------------------------
def mlp_ce_loss_kernel(x_ref, w1_ref, b1_ref, w2_ref, b2_ref, y_ref, o_ref):
    logits = _mlp_logits(x_ref, w1_ref, b1_ref, w2_ref, b2_ref)   # (TB, H2p) f32
    m = jnp.max(logits, axis=-1, keepdims=True)
    shifted = logits - m
    lse = jnp.log(jnp.sum(jnp.exp(shifted), axis=-1, keepdims=True))   # (TB, 1)

    labels = y_ref[...]                                                # (TB, 1) i32
    classes = jax.lax.broadcasted_iota(jnp.int32, shifted.shape, 1)    # (TB, H2p)
    picked = jnp.sum(jnp.where(classes == labels, shifted, 0.0),
                     axis=-1, keepdims=True)                           # (TB, 1)
    o_ref[...] = lse - picked                                          # per-row NLL


# ----------------------------------------------------------------------------
# Wrapper
# ----------------------------------------------------------------------------
def _pick_batch_tile(B, target=256):
    """Largest power-of-two tile <= target that divides B, capped at B//2 so
    the grid has >= 2 steps (v7x megacore); minimum 8 (sublane alignment)."""
    cap = min(target, max(B // 2, 8))
    for tb in (1024, 512, 256, 128, 64, 32, 16, 8):
        if tb <= cap and B % tb == 0:
            return tb
    return B  # fallback: single block


def init_params(key, input_size, hidden_size1, hidden_size2):
    """Init mirroring nn.Linear's U(-1/sqrt(fan_in), 1/sqrt(fan_in)).
    W1/W2 are stored pre-transposed as (in, out) in bf16; biases stay f32."""
    k1, k2, k3, k4 = jax.random.split(key, 4)
    lim1 = 1.0 / jnp.sqrt(jnp.float32(input_size))
    lim2 = 1.0 / jnp.sqrt(jnp.float32(hidden_size1))
    w1 = jax.random.uniform(k1, (input_size, hidden_size1), jnp.float32,
                            -lim1, lim1).astype(jnp.bfloat16)
    b1 = jax.random.uniform(k2, (1, hidden_size1), jnp.float32, -lim1, lim1)
    w2 = jax.random.uniform(k3, (hidden_size1, hidden_size2), jnp.float32,
                            -lim2, lim2).astype(jnp.bfloat16)
    b2 = jax.random.uniform(k4, (1, hidden_size2), jnp.float32, -lim2, lim2)
    return w1, b1, w2, b2


def torch_model_forward(x, params, y=None, *, batch_tile=256):
    w1, b1, w2, b2 = params
    B, D = x.shape
    H1 = w1.shape[1]
    H2 = w2.shape[1]

    # Lane-dense class dim: pad H2 up to a multiple of 128.  Zero weight
    # columns and -1e9 bias columns -> padded logits are -1e9, exp underflows
    # to 0, so softmax / log-sum-exp over the real classes is unchanged.
    H2p = ((H2 + _LANES - 1) // _LANES) * _LANES
    if H2p != H2:
        w2p = jnp.pad(w2, ((0, 0), (0, H2p - H2)))
        b2p = jnp.pad(b2, ((0, 0), (0, H2p - H2)), constant_values=-1e9)
    else:
        w2p, b2p = w2, b2

    tb = _pick_batch_tile(B, batch_tile)
    grid = (B // tb,)

    # Batch-tiled x / outputs; weights & biases are VMEM-resident (block (0,0)).
    x_spec = pl.BlockSpec((tb, D), lambda i: (i, 0))
    w1_spec = pl.BlockSpec((D, H1), lambda i: (0, 0))
    b1_spec = pl.BlockSpec((1, H1), lambda i: (0, 0))
    w2_spec = pl.BlockSpec((H1, H2p), lambda i: (0, 0))
    b2_spec = pl.BlockSpec((1, H2p), lambda i: (0, 0))

    matmul_flops = 2 * B * (D * H1 + H1 * H2p)
    weight_bytes = w1.size * 2 + b1.size * 4 + w2p.size * 2 + b2p.size * 4

    if y is None:
        cost = pl.CostEstimate(
            flops=matmul_flops,
            transcendentals=B * H2p,
            bytes_accessed=x.size * 4 + weight_bytes + B * H2p * 4,
        )
        probs = pl.pallas_call(
            mlp_softmax_kernel,
            out_shape=jax.ShapeDtypeStruct((B, H2p), jnp.float32),
            grid_spec=pltpu.PrefetchScalarGridSpec(
                num_scalar_prefetch=0,
                grid=grid,
                in_specs=[x_spec, w1_spec, b1_spec, w2_spec, b2_spec],
                out_specs=pl.BlockSpec((tb, H2p), lambda i: (i, 0)),
            ),
            compiler_params=pltpu.CompilerParams(
                dimension_semantics=("parallel",)),
            cost_estimate=cost,
        )(x, w1, b1, w2p, b2p)
        return probs[:, :H2]                     # drop padded classes
    else:
        y2d = y.reshape(B, 1).astype(jnp.int32)
        y_spec = pl.BlockSpec((tb, 1), lambda i: (i, 0))
        cost = pl.CostEstimate(
            flops=matmul_flops,
            transcendentals=B * (H2p + 1),
            bytes_accessed=x.size * 4 + weight_bytes + B * 4 + B * 4,
        )
        per_row = pl.pallas_call(
            mlp_ce_loss_kernel,
            out_shape=jax.ShapeDtypeStruct((B, 1), jnp.float32),
            grid_spec=pltpu.PrefetchScalarGridSpec(
                num_scalar_prefetch=0,
                grid=grid,
                in_specs=[x_spec, w1_spec, b1_spec, w2_spec, b2_spec, y_spec],
                out_specs=pl.BlockSpec((tb, 1), lambda i: (i, 0)),
            ),
            compiler_params=pltpu.CompilerParams(
                dimension_semantics=("parallel",)),  # both TCs split the batch
            cost_estimate=cost,
        )(x, w1, b1, w2p, b2p, y2d)
        return jnp.mean(per_row)                 # tiny XLA reduce: sum / B


if __name__ == "__main__":
    # Small shapes consistent with the module; B chosen so the grid has >1 step
    # (exercises pipelining / megacore sharding on both paths).
    B, INPUT, H1, H2 = 1024, 32, 64, 16

    key = jax.random.PRNGKey(0)
    kx, ky, kp = jax.random.split(key, 3)

    x = jax.random.normal(kx, (B, INPUT), dtype=jnp.float32)
    y = jax.random.randint(ky, (B,), 0, H2, dtype=jnp.int32)
    params = init_params(kp, INPUT, H1, H2)

    # Inference path: softmax probabilities over dim=1
    probs = jax.block_until_ready(torch_model_forward(x, params, y=None))

    # Training path: scalar cross-entropy loss
    loss = jax.block_until_ready(torch_model_forward(x, params, y=y))

    # Pure-JAX reference with matching precision (bf16 matmuls, f32 accum).
    w1, b1, w2, b2 = params
    h_ref = jnp.dot(x.astype(jnp.bfloat16), w1,
                    preferred_element_type=jnp.float32) + b1
    logits_ref = jnp.dot(h_ref.astype(jnp.bfloat16), w2,
                         preferred_element_type=jnp.float32) + b2
    probs_ref = jax.nn.softmax(logits_ref, axis=1)
    logp_ref = jax.nn.log_softmax(logits_ref, axis=1)
    loss_ref = jnp.mean(-jnp.take_along_axis(logp_ref, y[:, None], axis=1))

    assert probs.shape == (B, H2)
    assert jnp.allclose(jnp.sum(probs, axis=1), 1.0, atol=1e-3), "rows must sum to 1"
    assert jnp.allclose(probs, probs_ref, atol=1e-3), "softmax path mismatch"
    assert jnp.allclose(loss, loss_ref, atol=1e-3), "CE loss path mismatch"

    print("KERNEL_OK")
</pallas_src>

<mosaic_0001>
module attributes {stable_mosaic.version = 11 : i64} {
  func.func @mlp_softmax_kernel(%arg0: i32, %arg1: memref<256x32xf32, #tpu.memory_space<vmem>>, %arg2: memref<32x64xbf16, #tpu.memory_space<vmem>>, %arg3: memref<1x64xf32, #tpu.memory_space<vmem>>, %arg4: memref<64x128xbf16, #tpu.memory_space<vmem>>, %arg5: memref<1x128xf32, #tpu.memory_space<vmem>>, %arg6: memref<256x128xf32, #tpu.memory_space<vmem>>) attributes {dimension_semantics = [#tpu.dimension_semantics<parallel>], iteration_bounds = array<i64: 4>, scalar_prefetch = 0 : i64, scratch_operands = 0 : i64, tpu.core_type = #tpu.core_type<tc>, window_params = [{transform_indices = @transform_0, window_bounds = array<i64: 256, 32>}, {pipeline_mode = #tpu.pipeline_mode<synchronous>, transform_indices = @transform_1, window_bounds = array<i64: 32, 64>}, {pipeline_mode = #tpu.pipeline_mode<synchronous>, transform_indices = @transform_2, window_bounds = array<i64: 1, 64>}, {pipeline_mode = #tpu.pipeline_mode<synchronous>, transform_indices = @transform_3, window_bounds = array<i64: 64, 128>}, {pipeline_mode = #tpu.pipeline_mode<synchronous>, transform_indices = @transform_4, window_bounds = array<i64: 1, 128>}, {transform_indices = @transform_5, window_bounds = array<i64: 256, 128>}]} {
    %c0 = arith.constant 0 : index
    %c0_0 = arith.constant 0 : index
    %0 = vector.load %arg1[%c0, %c0_0] : memref<256x32xf32, #tpu.memory_space<vmem>>, vector<256x32xf32>
    %1 = arith.truncf %0 : vector<256x32xf32> to vector<256x32xbf16>
    %c0_1 = arith.constant 0 : index
    %c0_2 = arith.constant 0 : index
    %2 = vector.load %arg2[%c0_1, %c0_2] : memref<32x64xbf16, #tpu.memory_space<vmem>>, vector<32x64xbf16>
    %cst = arith.constant dense<0.000000e+00> : vector<256x64xf32>
    %3 = tpu.matmul %1, %2, %cst {dimension_numbers = #tpu.dot_dimension_numbers<[1], [0], [0], [1], [0, 0, 1, 1], [], []>} : vector<256x32xbf16>, vector<32x64xbf16>, vector<256x64xf32> -> vector<256x64xf32>
    %c0_3 = arith.constant 0 : index
    %c0_4 = arith.constant 0 : index
    %4 = vector.load %arg3[%c0_3, %c0_4] : memref<1x64xf32, #tpu.memory_space<vmem>>, vector<1x64xf32>
    %5 = vector.broadcast %4 : vector<1x64xf32> to vector<256x64xf32>
    %6 = arith.addf %3, %5 : vector<256x64xf32>
    %7 = arith.truncf %6 : vector<256x64xf32> to vector<256x64xbf16>
    %c0_5 = arith.constant 0 : index
    %c0_6 = arith.constant 0 : index
    %8 = vector.load %arg4[%c0_5, %c0_6] : memref<64x128xbf16, #tpu.memory_space<vmem>>, vector<64x128xbf16>
    %cst_7 = arith.constant dense<0.000000e+00> : vector<256x128xf32>
    %9 = tpu.matmul %7, %8, %cst_7 {dimension_numbers = #tpu.dot_dimension_numbers<[1], [0], [0], [1], [0, 0, 1, 1], [], []>} : vector<256x64xbf16>, vector<64x128xbf16>, vector<256x128xf32> -> vector<256x128xf32>
    %c0_8 = arith.constant 0 : index
    %c0_9 = arith.constant 0 : index
    %10 = vector.load %arg5[%c0_8, %c0_9] : memref<1x128xf32, #tpu.memory_space<vmem>>, vector<1x128xf32>
    %11 = vector.broadcast %10 : vector<1x128xf32> to vector<256x128xf32>
    %12 = arith.addf %9, %11 : vector<256x128xf32>
    %cst_10 = arith.constant dense<0xFF800000> : vector<256xf32>
    %13 = vector.multi_reduction <maximumf>, %12, %cst_10 [1] : vector<256x128xf32> to vector<256xf32>
    %14 = vector.shape_cast %13 : vector<256xf32> to vector<256x1xf32>
    %15 = vector.broadcast %14 : vector<256x1xf32> to vector<256x128xf32>
    %16 = arith.subf %12, %15 : vector<256x128xf32>
    %17 = math.exp %16 : vector<256x128xf32>
    %cst_11 = arith.constant dense<0.000000e+00> : vector<256xf32>
    %18 = vector.multi_reduction <add>, %17, %cst_11 [1] : vector<256x128xf32> to vector<256xf32>
    %19 = vector.shape_cast %18 : vector<256xf32> to vector<256x1xf32>
    %20 = vector.broadcast %19 : vector<256x1xf32> to vector<256x128xf32>
    %21 = arith.divf %17, %20 : vector<256x128xf32>
    %c0_12 = arith.constant 0 : index
    %c0_13 = arith.constant 0 : index
    %22 = vector.load %arg6[%c0_12, %c0_13] : memref<256x128xf32, #tpu.memory_space<vmem>>, vector<256x128xf32>
    tpu.vector_store %arg6[%c0_12, %c0_13], %21 {strides = array<i32>} : memref<256x128xf32, #tpu.memory_space<vmem>>, vector<256x128xf32>,
    return
  }
  func.func @transform_0(%arg0: i32) -> (i32, i32) {
    %c0_i32 = arith.constant 0 : i32
    %c0_i32_0 = arith.constant 0 : i32
    return %arg0, %c0_i32 : i32, i32
  }
  func.func @transform_1(%arg0: i32) -> (i32, i32) {
    %c0_i32 = arith.constant 0 : i32
    %c0_i32_0 = arith.constant 0 : i32
    %c0_i32_1 = arith.constant 0 : i32
    return %c0_i32, %c0_i32_0 : i32, i32
  }
  func.func @transform_2(%arg0: i32) -> (i32, i32) {
    %c0_i32 = arith.constant 0 : i32
    %c0_i32_0 = arith.constant 0 : i32
    %c0_i32_1 = arith.constant 0 : i32
    return %c0_i32, %c0_i32_0 : i32, i32
  }
  func.func @transform_3(%arg0: i32) -> (i32, i32) {
    %c0_i32 = arith.constant 0 : i32
    %c0_i32_0 = arith.constant 0 : i32
    %c0_i32_1 = arith.constant 0 : i32
    return %c0_i32, %c0_i32_0 : i32, i32
  }
  func.func @transform_4(%arg0: i32) -> (i32, i32) {
    %c0_i32 = arith.constant 0 : i32
    %c0_i32_0 = arith.constant 0 : i32
    %c0_i32_1 = arith.constant 0 : i32
    return %c0_i32, %c0_i32_0 : i32, i32
  }
  func.func @transform_5(%arg0: i32) -> (i32, i32) {
    %c0_i32 = arith.constant 0 : i32
    %c0_i32_0 = arith.constant 0 : i32
    return %arg0, %c0_i32 : i32, i32
  }
}

</mosaic_0001>

<bundles_post_ra>
// kernel: tpu_custom_call.1
= control target key start
LH: loop header
LB: loop body
LE: loop exit
PB: predicated region body
PF: predicated region fallthrough
CT: control target
= control target key end

     0   :  { %10 = vsyncpa [#allocation3], 0  ;;  %s2160_s0 = inlined_call_operand.vmem [shape: f32[1024,32], index: 0, kind: input, shape index: {}]   ;;  %s2161_s1 = inlined_call_operand.vmem [shape: bf16[32,64], index: 1, kind: input, shape index: {}]   ;;  %s2162_s2 = inlined_call_operand.vmem [shape: f32[1,64], index: 2, kind: input, shape index: {}]   ;;  %s2163_s3 = inlined_call_operand.vmem [shape: bf16[64,128], index: 3, kind: input, shape index: {}]   ;;  %s2164_s4 = inlined_call_operand.vmem [shape: f32[1,128], index: 4, kind: input, shape index: {}]   ;;  %s2165_s5 = inlined_call_operand.hbm [shape: f32[1024,128], index: 5, kind: output, shape index: {}]  }
   0x1   :  { %12 = vsyncpa [#allocation3 + $0x1], 0  ;;  %s1606_s18 = smov 0   ;;  %s1608_s19 = smov 0  }
   0x2   :  { %s1610_s20 = smov 0   ;;  %s1612_s21 = smov 0  }
   0x3 LB: > { %s1627_s22 = sadd.s32 4294967295, %s1571_s21   ;;  %s1169_s23 = sadd.s32 4294967294, %s1571_s21   ;;  %s1571_s21 = sphi %s1612_s21, %s2171_s21   ;;  %s1567_s20 = sphi %s1610_s20, %s2170_s20   ;;  %s1563_s19 = sphi %s1608_s19, %s2169_s19   ;;  %s1559_s18 = sphi %s1606_s18, %s2168_s18  }
   0x4   : > { %s1631_s24 = sadd.s32 1, %s1571_s21   ;;  %s135_s25 = sadd.s32 1, %s1567_s20 }
   0x5   : > { %s132_s26 = ssub.s32 %s1571_s21, %s1631_s24  ;;  %p145_p0 = scmp.ne.s32.totalorder %s1567_s20, %s1563_s19 }
   0x6   : > { %p133_p1 = scmp.eq.s32.totalorder %s132_s26, 0  ;;  %p146_p2 = scmp.eq.s32.totalorder %s1627_s22, 3 }
   0x7   : > { %p151_p3 = scmp.ne.s32.totalorder %s1563_s19, %s1559_s18  ;;  %p152_p4 = scmp.eq.s32.totalorder %s1169_s23, 3 }
   0x8   : > { %s1642_s27 = scalar_select %p133_p1, %s1567_s20, %s135_s25  }
   0x9   : > { %p1644_p5 = por %p146_p2, %p145_p0  ;;  %p1648_p6 = por %p152_p4, %p151_p3 }
   0xa   : > { %p1172_p7 = scmp.ge.s32.totalorder %s1571_s21, 1  ;;  %p191_p8 = scmp.lt.s32.totalorder %s1571_s21, 5 }
   0xc   : > { %p192_p9 = pnand %p1172_p7, %p191_p8 }
   0xd   : > { %s1174_s7 = sshll.u32 (!%p192_p9), %s1627_s22, 5  ;;  %s216_s10 = sand.u32 (!%p192_p9), 1, %s1563_s19  }
   0xe   : > { %195 = sbr.rel (%p192_p9) target bundleno = 817 (0x331), region = 40  ;;  %p220_p10 = scmp.lt.s32.totalorder (!%p192_p9), %s1174_s7, 127 }
   0xf   : > { %s1173_s11 = sshll.u32 (!%p192_p9), %s216_s10, 8  ;;  %s1221_s13 = sshll.u32 (!%p192_p9), %s1627_s22, 12 }
  0x10   : > { %s2112_s17 = scalar_lea.hbm (!%p192_p9), %s2165_s5, %s1221_s13  ;;  %s2120_s22 = scalar_lea.sflag (!%p192_p9), [#allocation3], %s216_s10 }
  0x11   : > { %s1573_s25 = smov (!%p192_p9), [#allocation2]  }
  0x12   : > { %s1515_s26 = sshll.u32 (!%p192_p9), %s1573_s25, 4  ;;  %s1516_s26 = int_to_ptr.vmem [resolvable:$false] %s1515_s26 }
  0x13   : > { %v1377_v0 = vld [vmem:[%s2161_s1 + $0x8] sm:$0xff]   ;;  %v1378_v1 = vld [vmem:[%s2161_s1] sm:$0xff]   ;;  %v1379_v2 = vld [vmem:[%s2163_s3 + $0x18] sm:$0xff]   ;;  %s2173_s7 = smov (!%p220_p10, %s1174_s7), 127  ;;  %vm298_vm0 = vcmask 261120   ;;  %vm563_vm1 = vcmask 523264  }
  0x14   : > { %1260 = vmatprep.subr.bf16.mxu0 %v1377_v0  ;;  %1296 = vmatprep.subr.bf16.mxu1 %v1379_v2  ;;  %s1175_s12 = sshll.u32 %s2173_s7, 3  ;;  %v1380_v51 = vld [vmem:[%s2163_s3 + $0x10] sm:$0xff]   ;;  %v1381_v52 = vld [vmem:[%s2163_s3 + $0x8] sm:$0xff]   ;;  %v1382_v53 = vld [vmem:[%s2163_s3] sm:$0xff]   ;;  %s1517_s30 = scalar_lea.vmem %s1516_s26, 8192 }
  0x15   : > { %1261 = vmatpush3.bf16.msra.mxu0 %v1377_v0  ;;  %1297 = vmatpush3.bf16.msra.mxu1 %v1379_v2  ;;  %s1667_s15 = scalar_lea.vmem %s2160_s0, %s1175_s12  ;;  %v1729_v57 = vld [vmem:[%s2162_s2] ss:$0 sm:$0xff]  ;;  %s2044_s12 = scalar_lea.vmem [#allocation2], %s1173_s11 }
  0x16   : > { %1262 = vmatprep.subr.bf16.mxu0 %v1378_v1  ;;  %v227_v3 = vld [vmem:[%s1667_s15] sm:$0xff]  ;;  %v228_v4 = vld [vmem:[%s1667_s15 + $0x8] sm:$0xff]  ;;  %v229_v5 = vld [vmem:[%s1667_s15 + $0x10] sm:$0xff]  ;;  %1298 = vmatprep.subr.bf16.mxu1 %v1380_v51  ;;  %s1107_s14 = sshll.u32 %s2044_s12, 4  ;;  %s2114_s14 = int_to_ptr.vmem [resolvable:$true] %s1107_s14 }
  0x17   : > { %v259_v6 = vpack.c.bf16 %v228_v4, %v227_v3  ;;  %v230_v7 = vld [vmem:[%s1667_s15 + $0x18] sm:$0xff]  ;;  %v231_v8 = vld [vmem:[%s1667_s15 + $0x20] sm:$0xff]  ;;  %v232_v9 = vld [vmem:[%s1667_s15 + $0x28] sm:$0xff]  ;;  %s1511_s23 = scalar_lea.vmem %s2114_s14, 4096  ;;  %p1518_p0 = scmp.lt.s32.totalorder %s2114_s14, %s1516_s26 }
  0x18   : > { %v260_v10 = vpack.c.bf16 %v230_v7, %v229_v5  ;;  %v261_v11 = vpack.c.bf16 %v232_v9, %v231_v8  ;;  %v233_v12 = vld [vmem:[%s1667_s15 + $0x30] sm:$0xff]  ;;  %v234_v13 = vld [vmem:[%s1667_s15 + $0x38] sm:$0xff]  ;;  %v235_v14 = vld [vmem:[%s1667_s15 + $0x40] sm:$0xff]  ;;  %p1512_p11 = scmp.ne.s32.totalorder %s2114_s14, %s1511_s23  ;;  %p1519_p1 = scmp.lt.s32.totalorder %s1517_s30, %s1511_s23 }
  0x19   : > { %1263 = vmatpush3.bf16.msra.mxu0 %v1378_v1  ;;  %1264 = vmatprep.mubr.msk.bf16.mxu0 %vm298_vm0, %v259_v6  ;;  %v236_v15 = vld [vmem:[%s1667_s15 + $0x48] sm:$0xff]  ;;  %v262_v16 = vpack.c.bf16 %v234_v13, %v233_v12  ;;  %v237_v18 = vld [vmem:[%s1667_s15 + $0x50] sm:$0xff]  ;;  %v238_v19 = vld [vmem:[%s1667_s15 + $0x58] sm:$0xff] }
  0x1a   : > { %v263_v17 = vpack.c.bf16 %v236_v15, %v235_v14  ;;  %v239_v20 = vld [vmem:[%s1667_s15 + $0x60] sm:$0xff]  ;;  %v240_v21 = vld [vmem:[%s1667_s15 + $0x68] sm:$0xff]  ;;  %v264_v22 = vpack.c.bf16 %v238_v19, %v237_v18  ;;  %v241_v24 = vld [vmem:[%s1667_s15 + $0x70] sm:$0xff]  ;;  %1299 = vmatpush3.bf16.msra.mxu1 %v1380_v51  ;;  %p1513_p12 = pnand %p1512_p11, %p1644_p5  ;;  %p1520_p2 = por %p1519_p1, %p1518_p0 }
  0x1b   : > { %v265_v23 = vpack.c.bf16 %v240_v21, %v239_v20  ;;  %v242_v25 = vld [vmem:[%s1667_s15 + $0x78] sm:$0xff]  ;;  %v243_v26 = vld [vmem:[%s1667_s15 + $0x80] sm:$0xff]  ;;  %v244_v27 = vld [vmem:[%s1667_s15 + $0x88] sm:$0xff]  ;;  %1300 = vmatprep.subr.bf16.mxu1 %v1381_v52 }
  0x1c   : > { %1265 = vmatmul.mubr.msk.bf16.vlgmr.msra.gmra.mxu0 %vm298_vm0, %v260_v10  ;;  %v266_v28 = vpack.c.bf16 %v242_v25, %v241_v24  ;;  %v267_v29 = vpack.c.bf16 %v244_v27, %v243_v26  ;;  %v245_v30 = vld [vmem:[%s1667_s15 + $0x90] sm:$0xff]  ;;  %v246_v31 = vld [vmem:[%s1667_s15 + $0x98] sm:$0xff]  ;;  %v247_v32 = vld [vmem:[%s1667_s15 + $0xa0] sm:$0xff]  ;;  %p1514_p13 = pneg %p1513_p12 }
  0x1d   : > { %1268 = vmatprep.mubr.msk.bf16.mxu0 %vm298_vm0, %v261_v11  ;;  %v248_v33 = vld [vmem:[%s1667_s15 + $0xa8] sm:$0xff]  ;;  %v268_v34 = vpack.c.bf16 %v246_v31, %v245_v30  ;;  %v249_v36 = vld [vmem:[%s1667_s15 + $0xb0] sm:$0xff]  ;;  %v250_v37 = vld [vmem:[%s1667_s15 + $0xb8] sm:$0xff] }
  0x1e   : > { %v269_v35 = vpack.c.bf16 %v248_v33, %v247_v32  ;;  %v251_v38 = vld [vmem:[%s1667_s15 + $0xc0] sm:$0xff]  ;;  %v252_v39 = vld [vmem:[%s1667_s15 + $0xc8] sm:$0xff]  ;;  %v270_v40 = vpack.c.bf16 %v250_v37, %v249_v36  ;;  %v253_v42 = vld [vmem:[%s1667_s15 + $0xd0] sm:$0xff]  ;;  %1301 = vmatpush3.bf16.msra.mxu1 %v1381_v52  ;;  %p1521_p3 = pnand %p1520_p2, %p1514_p13 }
  0x1f   : > { %v271_v41 = vpack.c.bf16 %v252_v39, %v251_v38  ;;  %v254_v43 = vld [vmem:[%s1667_s15 + $0xd8] sm:$0xff]  ;;  %v255_v44 = vld [vmem:[%s1667_s15 + $0xe0] sm:$0xff]  ;;  %v256_v45 = vld [vmem:[%s1667_s15 + $0xe8] sm:$0xff]  ;;  %1302 = vmatprep.subr.bf16.mxu1 %v1382_v53 }
  0x20   : > { %v272_v46 = vpack.c.bf16 %v254_v43, %v253_v42  ;;  %v273_v47 = vpack.c.bf16 %v256_v45, %v255_v44  ;;  %v257_v48 = vld [vmem:[%s1667_s15 + $0xf0] sm:$0xff]  ;;  %v258_v49 = vld [vmem:[%s1667_s15 + $0xf8] sm:$0xff] }
  0x21   : > { %v274_v50 = vpack.c.bf16 %v258_v49, %v257_v48 }
  0x22   : > { %1303 = vmatpush3.bf16.msra.mxu1 %v1382_v53 }
  0x24   : > { %1269 = vmatmul.mubr.msk.bf16.gmra.mxu0 %vm298_vm0, %v262_v16 }
  0x25   : > { %1272 = vmatprep.mubr.msk.bf16.mxu0 %vm298_vm0, %v263_v17 }
  0x2c   : > { %1273 = vmatmul.mubr.msk.bf16.gmra.mxu0 %vm298_vm0, %v264_v22 }
  0x2d   : > { %1276 = vmatprep.mubr.msk.bf16.mxu0 %vm298_vm0, %v265_v23 }
  0x34   : > { %1277 = vmatmul.mubr.msk.bf16.gmra.mxu0 %vm298_vm0, %v266_v28 }
  0x35   : > { %1280 = vmatprep.mubr.msk.bf16.mxu0 %vm298_vm0, %v267_v29 }
  0x3c   : > { %1281 = vmatmul.mubr.msk.bf16.gmra.mxu0 %vm298_vm0, %v268_v34 }
  0x3d   : > { %1284 = vmatprep.mubr.msk.bf16.mxu0 %vm298_vm0, %v269_v35 }
  0x44   : > { %1285 = vmatmul.mubr.msk.bf16.gmra.mxu0 %vm298_vm0, %v270_v40 }
  0x45   : > { %1288 = vmatprep.mubr.msk.bf16.mxu0 %vm298_vm0, %v271_v41 }
  0x4c   : > { %1289 = vmatmul.mubr.msk.bf16.gmra.mxu0 %vm298_vm0, %v272_v46 }
  0x4d   : > { %1292 = vmatprep.mubr.msk.bf16.mxu0 %vm298_vm0, %v273_v47 }
  0x54   : > { %1293 = vmatmul.mubr.msk.bf16.gmra.mxu0 %vm298_vm0, %v274_v50 }
  0xdc   : > { %v1266_v54 = vpop.f32.mrf.mxu0 }
  0xdd   : > { %v390_v62 = vadd.f32 %v1266_v54, %v1729_v57 }
  0xde   : > { %v381_v55 = vpop.f32.mrf.mxu0 }
  0xdf   : > { %v382_v60 = vadd.f32 %v1729_v57, %v381_v55 }
  0xe0   : > { %v1267_v56 = vpop.f32.mrf.mxu0 }
  0xe1   : > { %v393_v58 = vadd.f32 %v1267_v56, %v1729_v57 }
  0xe2   : > { %v384_v59 = vpop.f32.mrf.mxu0 }
  0xe3   : > { %v385_v61 = vadd.f32 %v1729_v57, %v384_v59  ;;  %v509_v1 = vpack.c.bf16 %v393_v58, %v390_v62 }
  0xe4   : > { %v1270_v63 = vpop.f32.mrf.mxu0 }
  0xe5   : > { %v508_v0 = vpack.c.bf16 %v385_v61, %v382_v60  ;;  %v406_v8 = vadd.f32 %v1270_v63, %v1729_v57 }
  0xe6   : > { %v397_v2 = vpop.f32.mrf.mxu0 }
  0xe7   : > { %1304 = vmatprep.mubr.msk.bf16.mxu1 %vm563_vm1, %v508_v0  ;;  %v398_v6 = vadd.f32 %v1729_v57, %v397_v2 }
  0xe8   : > { %v1271_v3 = vpop.f32.mrf.mxu0  ;;  %1305 = vmatmul.mubr.msk.bf16.vlgmr.msra.gmra.mxu1 %vm563_vm1, %v509_v1 }
  0xe9   : > { %v409_v4 = vadd.f32 %v1271_v3, %v1729_v57 }
  0xea   : > { %v400_v5 = vpop.f32.mrf.mxu0 }
  0xeb   : > { %v401_v7 = vadd.f32 %v1729_v57, %v400_v5  ;;  %v511_v11 = vpack.c.bf16 %v409_v4, %v406_v8  ;;  %v1782_v8 = vld [vmem:[%s2164_s4] ss:$0 sm:$0xff] }
  0xec   : > { %v1274_v9 = vpop.f32.mrf.mxu0 }
  0xed   : > { %v510_v10 = vpack.c.bf16 %v401_v7, %v398_v6  ;;  %v422_v18 = vadd.f32 %v1274_v9, %v1729_v57 }
  0xee   : > { %v413_v12 = vpop.f32.mrf.mxu0 }
  0xef   : > { %1308 = vmatprep.mubr.msk.bf16.mxu1 %vm563_vm1, %v510_v10  ;;  %v414_v16 = vadd.f32 %v1729_v57, %v413_v12 }
  0xf0   : > { %v1275_v13 = vpop.f32.mrf.mxu0  ;;  %1309 = vmatmul.mubr.msk.bf16.gmra.mxu1 %vm563_vm1, %v511_v11 }
  0xf1   : > { %v425_v14 = vadd.f32 %v1275_v13, %v1729_v57 }
  0xf2   : > { %v416_v15 = vpop.f32.mrf.mxu0 }
  0xf3   : > { %v417_v17 = vadd.f32 %v1729_v57, %v416_v15  ;;  %v513_v21 = vpack.c.bf16 %v425_v14, %v422_v18 }
  0xf4   : > { %v1278_v19 = vpop.f32.mrf.mxu0 }
  0xf5   : > { %v512_v20 = vpack.c.bf16 %v417_v17, %v414_v16  ;;  %v438_v28 = vadd.f32 %v1278_v19, %v1729_v57 }
  0xf6   : > { %v429_v22 = vpop.f32.mrf.mxu0 }
  0xf7   : > { %1312 = vmatprep.mubr.msk.bf16.mxu1 %vm563_vm1, %v512_v20  ;;  %v430_v26 = vadd.f32 %v1729_v57, %v429_v22 }
  0xf8   : > { %v1279_v23 = vpop.f32.mrf.mxu0  ;;  %1313 = vmatmul.mubr.msk.bf16.gmra.mxu1 %vm563_vm1, %v513_v21 }
  0xf9   : > { %v441_v24 = vadd.f32 %v1279_v23, %v1729_v57 }
  0xfa   : > { %v432_v25 = vpop.f32.mrf.mxu0 }
  0xfb   : > { %v433_v27 = vadd.f32 %v1729_v57, %v432_v25  ;;  %v515_v31 = vpack.c.bf16 %v441_v24, %v438_v28 }
  0xfc   : > { %v1282_v29 = vpop.f32.mrf.mxu0 }
  0xfd   : > { %v514_v30 = vpack.c.bf16 %v433_v27, %v430_v26  ;;  %v454_v38 = vadd.f32 %v1282_v29, %v1729_v57 }
  0xfe   : > { %v445_v32 = vpop.f32.mrf.mxu0 }
  0xff   : > { %1316 = vmatprep.mubr.msk.bf16.mxu1 %vm563_vm1, %v514_v30  ;;  %v446_v36 = vadd.f32 %v1729_v57, %v445_v32 }
 0x100   : > { %v1283_v33 = vpop.f32.mrf.mxu0  ;;  %1317 = vmatmul.mubr.msk.bf16.gmra.mxu1 %vm563_vm1, %v515_v31 }
 0x101   : > { %v457_v34 = vadd.f32 %v1283_v33, %v1729_v57 }
 0x102   : > { %v448_v35 = vpop.f32.mrf.mxu0 }
 0x103   : > { %v449_v37 = vadd.f32 %v1729_v57, %v448_v35  ;;  %v517_v41 = vpack.c.bf16 %v457_v34, %v454_v38 }
 0x104   : > { %v1286_v39 = vpop.f32.mrf.mxu0 }
 0x105   : > { %v516_v40 = vpack.c.bf16 %v449_v37, %v446_v36  ;;  %v470_v48 = vadd.f32 %v1286_v39, %v1729_v57 }
 0x106   : > { %v461_v42 = vpop.f32.mrf.mxu0 }
 0x107   : > { %1320 = vmatprep.mubr.msk.bf16.mxu1 %vm563_vm1, %v516_v40  ;;  %v462_v46 = vadd.f32 %v1729_v57, %v461_v42 }
 0x108   : > { %v1287_v43 = vpop.f32.mrf.mxu0  ;;  %1321 = vmatmul.mubr.msk.bf16.gmra.mxu1 %vm563_vm1, %v517_v41 }
 0x109   : > { %v473_v44 = vadd.f32 %v1287_v43, %v1729_v57 }
 0x10a   : > { %v464_v45 = vpop.f32.mrf.mxu0 }
 0x10b   : > { %v465_v47 = vadd.f32 %v1729_v57, %v464_v45  ;;  %v519_v51 = vpack.c.bf16 %v473_v44, %v470_v48 }
 0x10c   : > { %v1290_v49 = vpop.f32.mrf.mxu0 }
 0x10d   : > { %v518_v50 = vpack.c.bf16 %v465_v47, %v462_v46  ;;  %v486_v59 = vadd.f32 %v1290_v49, %v1729_v57 }
 0x10e   : > { %v477_v52 = vpop.f32.mrf.mxu0 }
 0x10f   : > { %1324 = vmatprep.mubr.msk.bf16.mxu1 %vm563_vm1, %v518_v50  ;;  %v478_v56 = vadd.f32 %v1729_v57, %v477_v52 }
 0x110   : > { %v1291_v53 = vpop.f32.mrf.mxu0  ;;  %1325 = vmatmul.mubr.msk.bf16.gmra.mxu1 %vm563_vm1, %v519_v51 }
 0x111   : > { %v489_v54 = vadd.f32 %v1291_v53, %v1729_v57 }
 0x112   : > { %v480_v55 = vpop.f32.mrf.mxu0 }
 0x113   : > { %v481_v58 = vadd.f32 %v1729_v57, %v480_v55  ;;  %v521_v62 = vpack.c.bf16 %v489_v54, %v486_v59 }
 0x114   : > { %v1294_v60 = vpop.f32.mrf.mxu0 }
 0x115   : > { %v520_v61 = vpack.c.bf16 %v481_v58, %v478_v56  ;;  %v502_v5 = vadd.f32 %v1294_v60, %v1729_v57 }
 0x116   : > { %v493_v63 = vpop.f32.mrf.mxu0 }
 0x117   : > { %1328 = vmatprep.mubr.msk.bf16.mxu1 %vm563_vm1, %v520_v61  ;;  %v494_v3 = vadd.f32 %v1729_v57, %v493_v63 }
 0x118   : > { %v1295_v0 = vpop.f32.mrf.mxu0  ;;  %1329 = vmatmul.mubr.msk.bf16.gmra.mxu1 %vm563_vm1, %v521_v62 }
 0x119   : > { %v505_v1 = vadd.f32 %v1295_v0, %v1729_v57 }
 0x11a   : > { %v496_v2 = vpop.f32.mrf.mxu0 }
 0x11b   : > { %v497_v4 = vadd.f32 %v1729_v57, %v496_v2  ;;  %v523_v7 = vpack.c.bf16 %v505_v1, %v502_v5 }
 0x11d   : > { %v522_v6 = vpack.c.bf16 %v497_v4, %v494_v3 }
 0x11f   : > { %1332 = vmatprep.mubr.msk.bf16.mxu1 %vm563_vm1, %v522_v6 }
 0x120   : > { %1333 = vmatmul.mubr.msk.bf16.gmra.mxu1 %vm563_vm1, %v523_v7 }
 0x1a8   : > { %v1306_v9 = vpop.f32.mrf.mxu1 }
 0x1a9   : > { %v1785_v10 = vadd.f32 %v1306_v9, %v1782_v8 }
 0x1aa   : > { %v646_v11 = vpop.f32.mrf.mxu1 }
 0x1ab   : > { %v1788_v12 = vadd.f32 %v1782_v8, %v646_v11  ;;  %777 = vmax.xlane.f32.xlu1 %v1785_v10 }
 0x1ac   : > { %v1307_v57 = vpop.f32.mrf.mxu1 }
 0x1ad   : > { %v1792_v13 = vadd.f32 %v1307_v57, %v1782_v8  ;;  %773 = vmax.xlane.f32.xlu0 %v1788_v12 }
 0x1ae   : > { %v649_v14 = vpop.f32.mrf.mxu1 }
 0x1af   : > { %v1796_v15 = vadd.f32 %v1782_v8, %v649_v14  ;;  %779 = vmax.xlane.f32.xlu1 %v1792_v13 }
 0x1b0   : > { %v1310_v16 = vpop.f32.mrf.mxu1 }
 0x1b1   : > { %775 = vmax.xlane.f32.xlu0 %v1796_v15  ;;  %v1801_v18 = vadd.f32 %v1310_v16, %v1782_v8 }
 0x1b2   : > { %v662_v17 = vpop.f32.mrf.mxu1 }
 0x1b3   : > { %v1808_v22 = vadd.f32 %v1782_v8, %v662_v17 }
 0x1b4   : > { %v1311_v19 = vpop.f32.mrf.mxu1 }
 0x1b5   : > { %v1804_v20 = vadd.f32 %v1311_v19, %v1782_v8  ;;  %785 = vmax.xlane.f32.xlu0 %v1801_v18 }
 0x1b6   : > { %v665_v21 = vpop.f32.mrf.mxu1 }
 0x1b7   : > { %787 = vmax.xlane.f32.xlu1 %v1804_v20  ;;  %v1812_v24 = vadd.f32 %v1782_v8, %v665_v21 }
 0x1b8   : > { %v1314_v23 = vpop.f32.mrf.mxu1 }
 0x1b9   : > { %781 = vmax.xlane.f32.xlu0 %v1808_v22  ;;  %v1816_v26 = vadd.f32 %v1314_v23, %v1782_v8 }
 0x1ba   : > { %v678_v25 = vpop.f32.mrf.mxu1 }
 0x1bb   : > { %783 = vmax.xlane.f32.xlu1 %v1812_v24  ;;  %v1824_v30 = vadd.f32 %v1782_v8, %v678_v25 }
 0x1bc   : > { %v1315_v27 = vpop.f32.mrf.mxu1 }
 0x1bd   : > { %v1820_v28 = vadd.f32 %v1315_v27, %v1782_v8  ;;  %793 = vmax.xlane.f32.xlu0 %v1816_v26 }
 0x1be   : > { %v681_v29 = vpop.f32.mrf.mxu1 }
 0x1bf   : > { %795 = vmax.xlane.f32.xlu1 %v1820_v28  ;;  %v1828_v32 = vadd.f32 %v1782_v8, %v681_v29 }
 0x1c0   : > { %v1318_v31 = vpop.f32.mrf.mxu1 }
 0x1c1   : > { %789 = vmax.xlane.f32.xlu0 %v1824_v30  ;;  %v1832_v34 = vadd.f32 %v1318_v31, %v1782_v8 }
 0x1c2   : > { %v694_v33 = vpop.f32.mrf.mxu1 }
 0x1c3   : > { %791 = vmax.xlane.f32.xlu1 %v1828_v32  ;;  %v1840_v38 = vadd.f32 %v1782_v8, %v694_v33 }
 0x1c4   : > { %v1319_v35 = vpop.f32.mrf.mxu1 }
 0x1c5   : > { %v1836_v36 = vadd.f32 %v1319_v35, %v1782_v8  ;;  %801 = vmax.xlane.f32.xlu0 %v1832_v34 }
 0x1c6   : > { %v697_v37 = vpop.f32.mrf.mxu1 }
 0x1c7   : > { %803 = vmax.xlane.f32.xlu1 %v1836_v36  ;;  %v1844_v40 = vadd.f32 %v1782_v8, %v697_v37 }
 0x1c8   : > { %v1322_v39 = vpop.f32.mrf.mxu1 }
 0x1c9   : > { %797 = vmax.xlane.f32.xlu0 %v1840_v38  ;;  %v1848_v42 = vadd.f32 %v1322_v39, %v1782_v8 }
 0x1ca   : > { %v710_v41 = vpop.f32.mrf.mxu1 }
 0x1cb   : > { %799 = vmax.xlane.f32.xlu1 %v1844_v40  ;;  %v1856_v46 = vadd.f32 %v1782_v8, %v710_v41 }
 0x1cc   : > { %v1323_v43 = vpop.f32.mrf.mxu1 }
 0x1cd   : > { %v1852_v44 = vadd.f32 %v1323_v43, %v1782_v8  ;;  %809 = vmax.xlane.f32.xlu0 %v1848_v42 }
 0x1ce   : > { %v713_v45 = vpop.f32.mrf.mxu1 }
 0x1cf   : > { %811 = vmax.xlane.f32.xlu1 %v1852_v44  ;;  %v1860_v48 = vadd.f32 %v1782_v8, %v713_v45 }
 0x1d0   : > { %v1326_v47 = vpop.f32.mrf.mxu1 }
 0x1d1   : > { %805 = vmax.xlane.f32.xlu0 %v1856_v46  ;;  %v1864_v50 = vadd.f32 %v1326_v47, %v1782_v8 }
 0x1d2   : > { %v726_v49 = vpop.f32.mrf.mxu1 }
 0x1d3   : > { %807 = vmax.xlane.f32.xlu1 %v1860_v48  ;;  %v1872_v54 = vadd.f32 %v1782_v8, %v726_v49 }
 0x1d4   : > { %v1327_v51 = vpop.f32.mrf.mxu1 }
 0x1d5   : > { %v1868_v52 = vadd.f32 %v1327_v51, %v1782_v8  ;;  %817 = vmax.xlane.f32.xlu0 %v1864_v50 }
 0x1d6   : > { %v729_v53 = vpop.f32.mrf.mxu1 }
 0x1d7   : > { %819 = vmax.xlane.f32.xlu1 %v1868_v52  ;;  %v1876_v56 = vadd.f32 %v1782_v8, %v729_v53 }
 0x1d8   : > { %v1330_v55 = vpop.f32.mrf.mxu1 }
 0x1d9   : > { %813 = vmax.xlane.f32.xlu0 %v1872_v54  ;;  %v1880_v59 = vadd.f32 %v1330_v55, %v1782_v8 }
 0x1da   : > { %v742_v58 = vpop.f32.mrf.mxu1 }
 0x1db   : > { %815 = vmax.xlane.f32.xlu1 %v1876_v56  ;;  %v1888_v63 = vadd.f32 %v1782_v8, %v742_v58 }
 0x1dc   : > { %v1331_v60 = vpop.f32.mrf.mxu1 }
 0x1dd   : > { %v1884_v61 = vadd.f32 %v1331_v60, %v1782_v8  ;;  %825 = vmax.xlane.f32.xlu0 %v1880_v59 }
 0x1de   : > { %v745_v62 = vpop.f32.mrf.mxu1 }
 0x1df   : > { %827 = vmax.xlane.f32.xlu1 %v1884_v61  ;;  %v1892_v1 = vadd.f32 %v1782_v8, %v745_v62 }
 0x1e0   : > { %v1334_v0 = vpop.f32.mrf.mxu1 }
 0x1e1   : > { %821 = vmax.xlane.f32.xlu0 %v1888_v63  ;;  %v1901_v6 = vadd.f32 %v1334_v0, %v1782_v8 }
 0x1e2   : > { %v758_v2 = vpop.f32.mrf.mxu1 }
 0x1e3   : > { %v1896_v3 = vadd.f32 %v1782_v8, %v758_v2  ;;  %823 = vmax.xlane.f32.xlu1 %v1892_v1 }
 0x1e4   : > { %v1335_v4 = vpop.f32.mrf.mxu1 }
 0x1e5   : > { %829 = vmax.xlane.f32.xlu0 %v1896_v3  ;;  %v1909_v9 = vadd.f32 %v1335_v4, %v1782_v8 }
 0x1e6   : > { %v761_v5 = vpop.f32.mrf.mxu1 }
 0x1e7   : > { %v1904_v7 = vadd.f32 %v1782_v8, %v761_v5 }
 0x1e9   : > { %831 = vmax.xlane.f32.xlu1 %v1904_v7  ;;  %833 = vmax.xlane.f32.xlu0 %v1901_v6 }
 0x1ed   : > { %835 = vmax.xlane.f32.xlu1 %v1909_v9 }
 0x234   : > { %v778_v11 = vpop.xlane.xlu1 %777 }
 0x235   : > { %v839_v57 = vsub.f32 %v1785_v10, %v778_v11 }
 0x236   : > { %v774_v14 = vpop.xlane.xlu0 %773 }
 0x237   : > { %v873_v16 = vmul.f32 1.442695, %v839_v57  ;;  %v837_v17 = vsub.f32 %v1788_v12, %v774_v14 }
 0x238   : > { %v780_v19 = vpop.xlane.xlu1 %779 }
 0x239   : > { %1383 = vpow2.f32 %v873_v16  ;;  %v869_v21 = vmul.f32 1.442695, %v837_v17  ;;  %v840_v23 = vsub.f32 %v1792_v13, %v780_v19 }
 0x23a   : > { %v776_v25 = vpop.xlane.xlu0 %775 }
 0x23b   : > { %v875_v27 = vmul.f32 1.442695, %v840_v23  ;;  %v838_v29 = vsub.f32 %v1796_v15, %v776_v25  ;;  %1385 = vpow2.f32 %v869_v21 }
 0x23d   : > { %1387 = vpow2.f32 %v875_v27  ;;  %v871_v8 = vmul.f32 1.442695, %v838_v29 }
 0x23e   : > { %v786_v31 = vpop.xlane.xlu0 %785 }
 0x23f   : > { %v843_v33 = vsub.f32 %v1801_v18, %v786_v31  ;;  %1389 = vpow2.f32 %v871_v8 }
 0x240   : > { %v788_v10 = vpop.xlane.xlu1 %787 }
 0x241   : > { %v881_v35 = vmul.f32 1.442695, %v843_v33  ;;  %v844_v12 = vsub.f32 %v1804_v20, %v788_v10 }
 0x242   : > { %v782_v37 = vpop.xlane.xlu0 %781 }
 0x243   : > { %1391 = vpow2.f32 %v881_v35  ;;  %v883_v39 = vmul.f32 1.442695, %v844_v12  ;;  %v841_v13 = vsub.f32 %v1808_v22, %v782_v37 }
 0x244   : > { %v784_v41 = vpop.xlane.xlu1 %783 }
 0x245   : > { %1393 = vpow2.f32 %v883_v39  ;;  %v877_v43 = vmul.f32 1.442695, %v841_v13  ;;  %v842_v15 = vsub.f32 %v1812_v24, %v784_v41 }
 0x246   : > { %v1920_v45 = vpop.eup %1383  ;;  %v794_v47 = vpop.xlane.xlu0 %793 }
 0x247   : > { %1395 = vpow2.f32 %v877_v43  ;;  %v879_v18 = vmul.f32 1.442695, %v842_v15  ;;  %v847_v49 = vsub.f32 %v1816_v26, %v794_v47  ;;  %937 = vadd.xlane.f32.xlu0 %v1920_v45 }
 0x248   : > { %v796_v20 = vpop.xlane.xlu1 %795  ;;  %v1924_v51 = vpop.eup %1385 }
 0x249   : > { %1397 = vpow2.f32 %v879_v18  ;;  %v889_v53 = vmul.f32 1.442695, %v847_v49  ;;  %v848_v22 = vsub.f32 %v1820_v28, %v796_v20 }
 0x24a   : > { %v1927_v55 = vpop.eup %1387  ;;  %v790_v58 = vpop.xlane.xlu0 %789 }
 0x24b   : > { %1399 = vpow2.f32 %v889_v53  ;;  %v891_v24 = vmul.f32 1.442695, %v848_v22  ;;  %v845_v60 = vsub.f32 %v1824_v30, %v790_v58  ;;  %939 = vadd.xlane.f32.xlu1 %v1927_v55  ;;  %933 = vadd.xlane.f32.xlu0 %v1924_v51 }
 0x24c   : > { %v792_v26 = vpop.xlane.xlu1 %791  ;;  %v1933_v2 = vpop.eup %1389 }
 0x24d   : > { %1401 = vpow2.f32 %v891_v24  ;;  %v885_v62 = vmul.f32 1.442695, %v845_v60  ;;  %v846_v0 = vsub.f32 %v1828_v32, %v792_v26 }
 0x24e   : > { %v802_v4 = vpop.xlane.xlu0 %801 }
 0x24f   : > { %1403 = vpow2.f32 %v885_v62  ;;  %v887_v28 = vmul.f32 1.442695, %v846_v0  ;;  %v851_v5 = vsub.f32 %v1832_v34, %v802_v4  ;;  %935 = vadd.xlane.f32.xlu1 %v1933_v2 }
 0x250   : > { %v1937_v11 = vpop.eup %1391  ;;  %v804_v30 = vpop.xlane.xlu1 %803 }
 0x251   : > { %1405 = vpow2.f32 %v887_v28  ;;  %v897_v57 = vmul.f32 1.442695, %v851_v5  ;;  %v852_v14 = vsub.f32 %v1836_v36, %v804_v30  ;;  %945 = vadd.xlane.f32.xlu0 %v1937_v11 }
 0x252   : > { %v1941_v16 = vpop.eup %1393  ;;  %v798_v32 = vpop.xlane.xlu0 %797 }
 0x253   : > { %1407 = vpow2.f32 %v897_v57  ;;  %v899_v17 = vmul.f32 1.442695, %v852_v14  ;;  %v849_v19 = vsub.f32 %v1840_v38, %v798_v32  ;;  %947 = vadd.xlane.f32.xlu1 %v1941_v16 }
 0x254   : > { %v1945_v34 = vpop.eup %1395  ;;  %v800_v21 = vpop.xlane.xlu1 %799 }
 0x255   : > { %1409 = vpow2.f32 %v899_v17  ;;  %v893_v23 = vmul.f32 1.442695, %v849_v19  ;;  %v850_v25 = vsub.f32 %v1844_v40, %v800_v21  ;;  %941 = vadd.xlane.f32.xlu0 %v1945_v34 }
 0x256   : > { %v1949_v36 = vpop.eup %1397  ;;  %v810_v27 = vpop.xlane.xlu0 %809 }
 0x257   : > { %1411 = vpow2.f32 %v893_v23  ;;  %v895_v29 = vmul.f32 1.442695, %v850_v25  ;;  %v855_v8 = vsub.f32 %v1848_v42, %v810_v27  ;;  %943 = vadd.xlane.f32.xlu1 %v1949_v36 }
 0x258   : > { %v1953_v38 = vpop.eup %1399  ;;  %v812_v31 = vpop.xlane.xlu1 %811 }
 0x259   : > { %1413 = vpow2.f32 %v895_v29  ;;  %v905_v33 = vmul.f32 1.442695, %v855_v8  ;;  %v856_v10 = vsub.f32 %v1852_v44, %v812_v31  ;;  %953 = vadd.xlane.f32.xlu0 %v1953_v38 }
 0x25a   : > { %v1957_v40 = vpop.eup %1401  ;;  %v806_v35 = vpop.xlane.xlu0 %805 }
 0x25b   : > { %1415 = vpow2.f32 %v905_v33  ;;  %v907_v12 = vmul.f32 1.442695, %v856_v10  ;;  %v853_v37 = vsub.f32 %v1856_v46, %v806_v35  ;;  %955 = vadd.xlane.f32.xlu1 %v1957_v40 }
 0x25c   : > { %v1961_v42 = vpop.eup %1403  ;;  %v808_v39 = vpop.xlane.xlu1 %807 }
 0x25d   : > { %1417 = vpow2.f32 %v907_v12  ;;  %v901_v13 = vmul.f32 1.442695, %v853_v37  ;;  %v854_v41 = vsub.f32 %v1860_v48, %v808_v39  ;;  %949 = vadd.xlane.f32.xlu0 %v1961_v42 }
 0x25e   : > { %v1965_v44 = vpop.eup %1405  ;;  %v818_v43 = vpop.xlane.xlu0 %817 }
 0x25f   : > { %1419 = vpow2.f32 %v901_v13  ;;  %v903_v15 = vmul.f32 1.442695, %v854_v41  ;;  %v859_v47 = vsub.f32 %v1864_v50, %v818_v43  ;;  %951 = vadd.xlane.f32.xlu1 %v1965_v44 }
 0x260   : > { %v1969_v46 = vpop.eup %1407  ;;  %v820_v18 = vpop.xlane.xlu1 %819 }
 0x261   : > { %1421 = vpow2.f32 %v903_v15  ;;  %v913_v49 = vmul.f32 1.442695, %v859_v47  ;;  %v860_v20 = vsub.f32 %v1868_v52, %v820_v18  ;;  %961 = vadd.xlane.f32.xlu0 %v1969_v46 }
 0x262   : > { %v1973_v48 = vpop.eup %1409  ;;  %v814_v53 = vpop.xlane.xlu0 %813 }
 0x263   : > { %1423 = vpow2.f32 %v913_v49  ;;  %v915_v22 = vmul.f32 1.442695, %v860_v20  ;;  %v857_v58 = vsub.f32 %v1872_v54, %v814_v53  ;;  %963 = vadd.xlane.f32.xlu1 %v1973_v48 }
 0x264   : > { %v1977_v50 = vpop.eup %1411  ;;  %v816_v24 = vpop.xlane.xlu1 %815 }
 0x265   : > { %1425 = vpow2.f32 %v915_v22  ;;  %v909_v60 = vmul.f32 1.442695, %v857_v58  ;;  %v858_v26 = vsub.f32 %v1876_v56, %v816_v24  ;;  %957 = vadd.xlane.f32.xlu0 %v1977_v50 }
 0x266   : > { %v1981_v52 = vpop.eup %1413  ;;  %v826_v62 = vpop.xlane.xlu0 %825 }
 0x267   : > { %1427 = vpow2.f32 %v909_v60  ;;  %v911_v0 = vmul.f32 1.442695, %v858_v26  ;;  %v863_v4 = vsub.f32 %v1880_v59, %v826_v62  ;;  %959 = vadd.xlane.f32.xlu1 %v1981_v52 }
 0x268   : > { %v1985_v54 = vpop.eup %1415  ;;  %v828_v28 = vpop.xlane.xlu1 %827 }
 0x269   : > { %1429 = vpow2.f32 %v911_v0  ;;  %v921_v5 = vmul.f32 1.442695, %v863_v4  ;;  %v864_v30 = vsub.f32 %v1884_v61, %v828_v28  ;;  %969 = vadd.xlane.f32.xlu0 %v1985_v54 }
 0x26a   : > { %v1989_v56 = vpop.eup %1417  ;;  %v822_v57 = vpop.xlane.xlu0 %821 }
 0x26b   : > { %1431 = vpow2.f32 %v921_v5  ;;  %v923_v14 = vmul.f32 1.442695, %v864_v30  ;;  %v861_v32 = vsub.f32 %v1888_v63, %v822_v57  ;;  %971 = vadd.xlane.f32.xlu1 %v1989_v56 }
 0x26c   : > { %v1993_v59 = vpop.eup %1419  ;;  %v824_v17 = vpop.xlane.xlu1 %823 }
 0x26d   : > { %1433 = vpow2.f32 %v923_v14  ;;  %v917_v19 = vmul.f32 1.442695, %v861_v32  ;;  %v862_v21 = vsub.f32 %v1892_v1, %v824_v17  ;;  %965 = vadd.xlane.f32.xlu0 %v1993_v59 }
 0x26e   : > { %v1997_v61 = vpop.eup %1421  ;;  %v830_v23 = vpop.xlane.xlu0 %829 }
 0x26f   : > { %1435 = vpow2.f32 %v917_v19  ;;  %v919_v25 = vmul.f32 1.442695, %v862_v21  ;;  %v865_v27 = vsub.f32 %v1896_v3, %v830_v23  ;;  %967 = vadd.xlane.f32.xlu1 %v1997_v61 }
 0x270   : > { %v2001_v63 = vpop.eup %1423 }
 0x271   : > { %1437 = vpow2.f32 %v919_v25  ;;  %v925_v29 = vmul.f32 1.442695, %v865_v27  ;;  %977 = vadd.xlane.f32.xlu0 %v2001_v63 }
 0x272   : > { %v2004_v8 = vpop.eup %1425  ;;  %v832_v1 = vpop.xlane.xlu1 %831 }
 0x273   : > { %v834_v31 = vpop.xlane.xlu0 %833  ;;  %1439 = vpow2.f32 %v925_v29  ;;  %v866_v33 = vsub.f32 %v1904_v7, %v832_v1  ;;  %979 = vadd.xlane.f32.xlu1 %v2004_v8 }
 0x274   : > { %v867_v10 = vsub.f32 %v1901_v6, %v834_v31  ;;  %v2009_v3 = vpop.eup %1427 }
 0x275   : > { %v927_v35 = vmul.f32 1.442695, %v866_v33  ;;  %973 = vadd.xlane.f32.xlu0 %v2009_v3 }
 0x276   : > { %v929_v12 = vmul.f32 1.442695, %v867_v10  ;;  %v2012_v37 = vpop.eup %1429  ;;  %v836_v39 = vpop.xlane.xlu1 %835 }
 0x277   : > { %1441 = vpow2.f32 %v927_v35  ;;  %v868_v13 = vsub.f32 %v1909_v9, %v836_v39  ;;  %975 = vadd.xlane.f32.xlu1 %v2012_v37 }
 0x278   : > { %v2016_v41 = vpop.eup %1431  ;;  %1443 = vpow2.f32 %v929_v12 }
 0x279   : > { %v931_v6 = vmul.f32 1.442695, %v868_v13  ;;  %985 = vadd.xlane.f32.xlu0 %v2016_v41 }
 0x27a   : > { %v2019_v7 = vpop.eup %1433 }
 0x27b   : > { %1445 = vpow2.f32 %v931_v6  ;;  %987 = vadd.xlane.f32.xlu1 %v2019_v7 }
 0x27c   : > { %v2022_v43 = vpop.eup %1435 }
 0x27d   : > { %981 = vadd.xlane.f32.xlu0 %v2022_v43 }
 0x27e   : > { %v2025_v15 = vpop.eup %1437 }
 0x27f   : > { %983 = vadd.xlane.f32.xlu1 %v2025_v15 }
 0x280   : > { %v2028_v9 = vpop.eup %1439 }
 0x281   : > { %989 = vadd.xlane.f32.xlu0 %v2028_v9 }
 0x284   : > { %v2031_v47 = vpop.eup %1441 }
 0x285   : > { %v2033_v18 = vpop.eup %1443  ;;  %991 = vadd.xlane.f32.xlu1 %v2031_v47 }
 0x286   : > { %993 = vadd.xlane.f32.xlu0 %v2033_v18 }
 0x288   : > { %v2037_v49 = vpop.eup %1445 }
 0x289   : > { %995 = vadd.xlane.f32.xlu1 %v2037_v49 }
 0x2d0   : > { %v938_v20 = vpop.xlane.xlu0 %937 }
 0x2d1   : > { %1447 = vrcp.f32 %v938_v20 }
 0x2d4   : > { %v940_v53 = vpop.xlane.xlu1 %939  ;;  %v934_v22 = vpop.xlane.xlu0 %933 }
 0x2d5   : > { %1449 = vrcp.f32 %v940_v53 }
 0x2d6   : > { %1451 = vrcp.f32 %v934_v22 }
 0x2d8   : > { %v936_v58 = vpop.xlane.xlu1 %935 }
 0x2d9   : > { %1453 = vrcp.f32 %v936_v58 }
 0x2da   : > { %v946_v24 = vpop.xlane.xlu0 %945 }
 0x2db   : > { %1455 = vrcp.f32 %v946_v24 }
 0x2dc   : > { %v948_v60 = vpop.xlane.xlu1 %947 }
 0x2dd   : > { %1457 = vrcp.f32 %v948_v60 }
 0x2de   : > { %v1448_v26 = vpop.eup %1447  ;;  %v942_v62 = vpop.xlane.xlu0 %941 }
 0x2df   : > { %v1002_v0 = vmul.f32 %v1448_v26, %v1920_v45  ;;  %1459 = vrcp.f32 %v942_v62 }
 0x2e0   : > { %v944_v4 = vpop.xlane.xlu1 %943 }
 0x2e1   : > { %1063 = vst [vmem:[%s2044_s12 + $0x10] sm:$0xff] %v1002_v0  ;;  %1461 = vrcp.f32 %v944_v4 }
 0x2e2   : > { %v1450_v28 = vpop.eup %1449  ;;  %v954_v5 = vpop.xlane.xlu0 %953 }
 0x2e3   : > { %v1452_v30 = vpop.eup %1451  ;;  %v1004_v57 = vmul.f32 %v1450_v28, %v1927_v55  ;;  %1463 = vrcp.f32 %v954_v5 }
 0x2e4   : > { %v998_v14 = vmul.f32 %v1452_v30, %v1924_v51  ;;  %v956_v45 = vpop.xlane.xlu1 %955 }
 0x2e5   : > { %1064 = vst [vmem:[%s2044_s12 + $0x18] sm:$0xff] %v1004_v57  ;;  %1465 = vrcp.f32 %v956_v45 }
 0x2e6   : > { %v1454_v32 = vpop.eup %1453  ;;  %1061 = vst [vmem:[%s2044_s12] sm:$0xff] %v998_v14  ;;  %v950_v17 = vpop.xlane.xlu0 %949 }
 0x2e7   : > { %v1000_v19 = vmul.f32 %v1454_v32, %v1933_v2  ;;  %1467 = vrcp.f32 %v950_v17 }
 0x2e8   : > { %v1456_v21 = vpop.eup %1455  ;;  %v952_v23 = vpop.xlane.xlu1 %951 }
 0x2e9   : > { %1062 = vst [vmem:[%s2044_s12 + $0x8] sm:$0xff] %v1000_v19  ;;  %v1010_v55 = vmul.f32 %v1456_v21, %v1937_v11  ;;  %1469 = vrcp.f32 %v952_v23 }
 0x2ea   : > { %v1458_v25 = vpop.eup %1457  ;;  %v962_v51 = vpop.xlane.xlu0 %961 }
 0x2eb   : > { %1067 = vst [vmem:[%s2044_s12 + $0x30] sm:$0xff] %v1010_v55  ;;  %v1012_v27 = vmul.f32 %v1458_v25, %v1941_v16  ;;  %1471 = vrcp.f32 %v962_v51 }
 0x2ec   : > { %v1460_v29 = vpop.eup %1459  ;;  %v964_v1 = vpop.xlane.xlu1 %963 }
 0x2ed   : > { %1068 = vst [vmem:[%s2044_s12 + $0x38] sm:$0xff] %v1012_v27  ;;  %v1006_v2 = vmul.f32 %v1460_v29, %v1945_v34  ;;  %1473 = vrcp.f32 %v964_v1 }
 0x2ee   : > { %v1462_v31 = vpop.eup %1461  ;;  %v958_v33 = vpop.xlane.xlu0 %957 }
 0x2ef   : > { %1065 = vst [vmem:[%s2044_s12 + $0x20] sm:$0xff] %v1006_v2  ;;  %v1008_v11 = vmul.f32 %v1462_v31, %v1949_v36  ;;  %1475 = vrcp.f32 %v958_v33 }
 0x2f0   : > { %v1464_v10 = vpop.eup %1463  ;;  %v960_v35 = vpop.xlane.xlu1 %959 }
 0x2f1   : > { %1066 = vst [vmem:[%s2044_s12 + $0x28] sm:$0xff] %v1008_v11  ;;  %v1018_v16 = vmul.f32 %v1464_v10, %v1953_v38  ;;  %1477 = vrcp.f32 %v960_v35 }
 0x2f2   : > { %v1466_v12 = vpop.eup %1465  ;;  %v970_v39 = vpop.xlane.xlu0 %969 }
 0x2f3   : > { %1071 = vst [vmem:[%s2044_s12 + $0x50] sm:$0xff] %v1018_v16  ;;  %v1020_v34 = vmul.f32 %v1466_v12, %v1957_v40  ;;  %1479 = vrcp.f32 %v970_v39 }
 0x2f4   : > { %v1468_v13 = vpop.eup %1467  ;;  %v972_v6 = vpop.xlane.xlu1 %971 }
 0x2f5   : > { %1072 = vst [vmem:[%s2044_s12 + $0x58] sm:$0xff] %v1020_v34  ;;  %v1014_v36 = vmul.f32 %v1468_v13, %v1961_v42  ;;  %1481 = vrcp.f32 %v972_v6 }
 0x2f6   : > { %v1470_v20 = vpop.eup %1469  ;;  %v966_v53 = vpop.xlane.xlu0 %965 }
 0x2f7   : > { %1069 = vst [vmem:[%s2044_s12 + $0x40] sm:$0xff] %v1014_v36  ;;  %v1016_v38 = vmul.f32 %v1470_v20, %v1965_v44  ;;  %1483 = vrcp.f32 %v966_v53 }
 0x2f8   : > { %v1472_v22 = vpop.eup %1471  ;;  %v968_v58 = vpop.xlane.xlu1 %967 }
 0x2f9   : > { %1070 = vst [vmem:[%s2044_s12 + $0x48] sm:$0xff] %v1016_v38  ;;  %v1026_v40 = vmul.f32 %v1472_v22, %v1969_v46  ;;  %1485 = vrcp.f32 %v968_v58 }
 0x2fa   : > { %v1474_v24 = vpop.eup %1473  ;;  %v978_v60 = vpop.xlane.xlu0 %977 }
 0x2fb   : > { %1075 = vst [vmem:[%s2044_s12 + $0x70] sm:$0xff] %v1026_v40  ;;  %v1028_v42 = vmul.f32 %v1474_v24, %v1973_v48  ;;  %1487 = vrcp.f32 %v978_v60 }
 0x2fc   : > { %v1476_v26 = vpop.eup %1475  ;;  %v980_v62 = vpop.xlane.xlu1 %979 }
 0x2fd   : > { %1076 = vst [vmem:[%s2044_s12 + $0x78] sm:$0xff] %v1028_v42  ;;  %v1022_v44 = vmul.f32 %v1476_v26, %v1977_v50  ;;  %1489 = vrcp.f32 %v980_v62 }
 0x2fe   : > { %v1478_v0 = vpop.eup %1477  ;;  %v974_v4 = vpop.xlane.xlu0 %973 }
 0x2ff   : > { %1073 = vst [vmem:[%s2044_s12 + $0x60] sm:$0xff] %v1022_v44  ;;  %v1024_v46 = vmul.f32 %v1478_v0, %v1981_v52  ;;  %1491 = vrcp.f32 %v974_v4 }
 0x300   : > { %v1480_v28 = vpop.eup %1479  ;;  %v976_v5 = vpop.xlane.xlu1 %975 }
 0x301   : > { %1074 = vst [vmem:[%s2044_s12 + $0x68] sm:$0xff] %v1024_v46  ;;  %v1034_v48 = vmul.f32 %v1480_v28, %v1985_v54  ;;  %1493 = vrcp.f32 %v976_v5 }
 0x302   : > { %v1482_v30 = vpop.eup %1481  ;;  %v986_v57 = vpop.xlane.xlu0 %985 }
 0x303   : > { %1079 = vst [vmem:[%s2044_s12 + $0x90] sm:$0xff] %v1034_v48  ;;  %v1036_v50 = vmul.f32 %v1482_v30, %v1989_v56  ;;  %1495 = vrcp.f32 %v986_v57 }
 0x304   : > { %v1484_v14 = vpop.eup %1483  ;;  %v988_v45 = vpop.xlane.xlu1 %987 }
 0x305   : > { %1080 = vst [vmem:[%s2044_s12 + $0x98] sm:$0xff] %v1036_v50  ;;  %v1030_v52 = vmul.f32 %v1484_v14, %v1993_v59  ;;  %1497 = vrcp.f32 %v988_v45 }
 0x306   : > { %v1486_v32 = vpop.eup %1485  ;;  %v982_v17 = vpop.xlane.xlu0 %981 }
 0x307   : > { %1077 = vst [vmem:[%s2044_s12 + $0x80] sm:$0xff] %v1030_v52  ;;  %v1032_v54 = vmul.f32 %v1486_v32, %v1997_v61  ;;  %1499 = vrcp.f32 %v982_v17 }
 0x308   : > { %v1488_v19 = vpop.eup %1487  ;;  %v984_v21 = vpop.xlane.xlu1 %983 }
 0x309   : > { %1078 = vst [vmem:[%s2044_s12 + $0x88] sm:$0xff] %v1032_v54  ;;  %v1042_v56 = vmul.f32 %v1488_v19, %v2001_v63  ;;  %1501 = vrcp.f32 %v984_v21 }
 0x30a   : > { %v1490_v23 = vpop.eup %1489  ;;  %v990_v55 = vpop.xlane.xlu0 %989 }
 0x30b   : > { %1083 = vst [vmem:[%s2044_s12 + $0xb0] sm:$0xff] %v1042_v56  ;;  %v1044_v59 = vmul.f32 %v1490_v23, %v2004_v8  ;;  %1503 = vrcp.f32 %v990_v55 }
 0x30c   : > { %v1492_v25 = vpop.eup %1491 }
 0x30d   : > { %1084 = vst [vmem:[%s2044_s12 + $0xb8] sm:$0xff] %v1044_v59  ;;  %v1038_v61 = vmul.f32 %v1492_v25, %v2009_v3 }
 0x30e   : > { %v1494_v51 = vpop.eup %1493  ;;  %v992_v27 = vpop.xlane.xlu1 %991 }
 0x30f   : > { %1081 = vst [vmem:[%s2044_s12 + $0xa0] sm:$0xff] %v1038_v61  ;;  %v1040_v29 = vmul.f32 %v1494_v51, %v2012_v37  ;;  %1505 = vrcp.f32 %v992_v27  ;;  %v994_v63 = vpop.xlane.xlu0 %993 }
 0x310   : > { %v1496_v1 = vpop.eup %1495  ;;  %1507 = vrcp.f32 %v994_v63 }
 0x311   : > { %1082 = vst [vmem:[%s2044_s12 + $0xa8] sm:$0xff] %v1040_v29  ;;  %v1050_v8 = vmul.f32 %v1496_v1, %v2016_v41 }
 0x312   : > { %v1498_v2 = vpop.eup %1497  ;;  %v996_v31 = vpop.xlane.xlu1 %995 }
 0x313   : > { %1087 = vst [vmem:[%s2044_s12 + $0xd0] sm:$0xff] %v1050_v8  ;;  %v1052_v3 = vmul.f32 %v1498_v2, %v2019_v7  ;;  %1509 = vrcp.f32 %v996_v31 }
 0x314   : > { %v1500_v33 = vpop.eup %1499 }
 0x315   : > { %1088 = vst [vmem:[%s2044_s12 + $0xd8] sm:$0xff] %v1052_v3  ;;  %v1046_v37 = vmul.f32 %v1500_v33, %v2022_v43 }
 0x316   : > { %v1502_v11 = vpop.eup %1501 }
 0x317   : > { %1085 = vst [vmem:[%s2044_s12 + $0xc0] sm:$0xff] %v1046_v37  ;;  %v1048_v10 = vmul.f32 %v1502_v11, %v2025_v15 }
 0x318   : > { %v1504_v35 = vpop.eup %1503 }
 0x319   : > { %1086 = vst [vmem:[%s2044_s12 + $0xc8] sm:$0xff] %v1048_v10  ;;  %v1054_v41 = vmul.f32 %v1504_v35, %v2028_v9 }
 0x31b   : > { %1089 = vst [vmem:[%s2044_s12 + $0xe0] sm:$0xff] %v1054_v41 }
 0x31c   : > { %v1506_v7 = vpop.eup %1505 }
 0x31d   : > { %v1508_v16 = vpop.eup %1507  ;;  %v1056_v12 = vmul.f32 %v1506_v7, %v2031_v47 }
 0x31e   : > { %v1058_v43 = vmul.f32 %v1508_v16, %v2033_v18 }
 0x31f   : > { %1090 = vst [vmem:[%s2044_s12 + $0xe8] sm:$0xff] %v1056_v12 }
 0x320   : > { %v1510_v39 = vpop.eup %1509  ;;  %1091 = vst [vmem:[%s2044_s12 + $0xf0] sm:$0xff] %v1058_v43 }
 0x321   : > { %v1060_v15 = vmul.f32 %v1510_v39, %v2037_v49 }
 0x323   : > { %1092 = vst [vmem:[%s2044_s12 + $0xf8] sm:$0xff] %v1060_v15 }
 0x324   : > { %1524 = shalt.err (!%p1521_p3)
}
 0x325   : > { %s1525_s6 = scalar_lea.hbm %s2112_s17, 4096  ;;  %s1529_s9 = scalar_lea.hbm %s2165_s5, 16384 }
 0x326   : > { %p1526_p4 = scmp.ne.s32.totalorder %s2112_s17, %s1525_s6  ;;  %p1530_p9 = scmp.lt.s32.totalorder %s2112_s17, %s2165_s5 }
 0x327   : > { %p1531_p10 = scmp.lt.s32.totalorder %s1529_s9, %s1525_s6 }
 0x328   : > { %p1527_p7 = pnand %p1526_p4, %p1644_p5 }
 0x329   : > { %p1532_p11 = por %p1531_p10, %p1530_p9 }
 0x32a   : > { %p1528_p8 = pneg %p1527_p7 }
 0x32c   : > { %p1533_p12 = pnand %p1532_p11, %p1528_p8 }
 0x32e   : > { %1536 = shalt.err (!%p1533_p12)
}
 0x32f   : > { %s1574_s12 = smov 128   ;;  %s1575_s13 = smov 8  }
 0x330   : > { %1336 = dma.vmem_to_hbm [thread:$0]  (%p1644_p5), %s2114_s14, 4096, %s2112_s17, %s2120_s22, %s1574_s12, %s1574_s12, %s1575_s13  }
 0x331 PF: > { %p1342_p13 = scmp.ge.s32.totalorder %s1571_s21, 2  ;;  %s1122_s15 = sand.u32 1, %s1559_s18  }
 0x332   : > { %s1123_s16 = scalar_lea.sflag [#allocation3], %s1122_s15 }
 0x333   : > { %p1339_p0 = pnand %p1342_p13, %p1648_p6 }
 0x335   : > { %p1340_p1 = pneg %p1339_p0 }
 0x337   : > { %1554 = dma.done.wait (%p1340_p1), %s1123_s16, 4096  }
 0x338   : > { %1556 = vsyncadd (%p1340_p1), %s1123_s16, 4294963200  ;;  %p15_p2 = scmp.ge.s32.totalorder %s1631_s24, 6   ;;  %s2168_s18 = smov %s1563_s19 }
 0x339   : > { %s2169_s19 = smov %s1567_s20  ;;  %s2170_s20 = smov %s1642_s27 }
 0x33a   : > { %s2171_s21 = smov %s1631_s24  ;;  %17 = sbr.rel (!%p15_p2) target bundleno = 3 (0x3), region = 75 }
 0x33f   :  { %1128 = vsyncpa [#allocation3], 1 }
 0x340   :  { %1130 = vsyncpa [#allocation3 + $0x1], 1 }

</bundles_post_ra>
